<compile_context>
chip_gen: v5e
topology: v5e:2x2
jax: 0.10.0
libtpu: 0.0.40
codegen_flags: <defaults>
</compile_context>

<pallas_src>
import functools

import jax
import jax.numpy as jnp
from jax.experimental import pallas as pl
from jax.experimental.pallas import tpu as pltpu


def _round_up(x, m):
    return (x + m - 1) // m * m


def _choose_tile_b(n, c, itemsize, per_block_bytes=4 * 1024 * 1024, max_tile=8192):
    """Largest batch tile (multiple of 8) whose per-input block stays ~<= 4 MiB."""
    rows = max(per_block_bytes // max(c * itemsize, 1), 8)
    rows = min(rows, max_tile)
    rows = min(rows, _round_up(n, 8))          # no point tiling past the batch
    rows = max(8, (rows // 8) * 8)
    return int(rows)


def _partial_loss_kernel(logits_ref, lab_ref, loss_ref, acc_ref, *,
                         total_n, tile_b, tiles_per_split):
    s = pl.program_id(0)        # split / core axis ("parallel")
    i = pl.program_id(1)        # batch-tile axis within the split ("arbitrary")

    @pl.when(i == 0)
    def _():
        acc_ref[...] = jnp.zeros_like(acc_ref)

    x = logits_ref[...].astype(jnp.float32)       # (tile_b, C)
    lab = lab_ref[...].astype(jnp.float32)        # (tile_b, C)

    # Mask rows past the true batch size (partial last tile, and clamped
    # duplicate tiles when total tile count is not divisible by num_splits).
    tile_idx = s * tiles_per_split + i
    row = tile_idx * tile_b + jax.lax.broadcasted_iota(
        jnp.int32, (x.shape[0], 1), 0)            # (tile_b, 1)
    valid = row < total_n
    x = jnp.where(valid, x, 0.0)
    lab = jnp.where(valid, lab, 0.0)              # masked rows contribute 0

    # Numerically stable log-sum-exp along the class (lane) axis.
    m = jnp.max(x, axis=1, keepdims=True)                               # (tile_b, 1)
    shifted = x - m
    lse = jnp.log(jnp.sum(jnp.exp(shifted), axis=1, keepdims=True))     # (tile_b, 1)

    # -(log_softmax(x) * labels) == (lse - shifted) * labels.
    # Accumulate per-class partial sums in VMEM; the cross-lane reduce to a
    # scalar is deferred to the epilogue (keeps the steady-state loop off the
    # scalar path).
    acc_ref[...] += jnp.sum((lse - shifted) * lab, axis=0, keepdims=True)  # (1, C)

    @pl.when(i == pl.num_programs(1) - 1)
    def _():
        partial = jnp.sum(acc_ref[...])           # scalar for this split
        loss_ref[...] = jnp.zeros(loss_ref.shape, jnp.float32) + partial


def partial_loss(outputs, labels, *, tile_b=None, num_splits=None):
    """Pallas implementation of PiCO partial_loss.forward.

    outputs: [N, C] logits, labels: [N, C] (soft) partial-label weights.
    Returns a scalar float32 loss.
    """
    n, c = outputs.shape
    assert labels.shape == (n, c)

    out_itemsize = jnp.dtype(outputs.dtype).itemsize
    lab_itemsize = jnp.dtype(labels.dtype).itemsize

    if tile_b is None:
        tile_b = _choose_tile_b(n, c, max(out_itemsize, lab_itemsize))
    tile_b = max(8, (int(tile_b) // 8) * 8)

    total_tiles = pl.cdiv(n, tile_b)
    if num_splits is None:
        # v7x has 2 TensorCores; a 2-way "parallel" split is a harmless serial
        # loop on 1-TC v5e/v6e.
        num_splits = 2 if total_tiles >= 2 else 1
    num_splits = max(1, min(int(num_splits), total_tiles))
    tiles_per_split = pl.cdiv(total_tiles, num_splits)

    kernel = functools.partial(
        _partial_loss_kernel,
        total_n=n, tile_b=tile_b, tiles_per_split=tiles_per_split)

    def in_map(s, i):
        t = s * tiles_per_split + i
        # Clamp phantom tiles (when num_splits doesn't divide total_tiles); the
        # kernel masks their rows out, so re-reading the last real block is OK.
        return (jnp.minimum(t, total_tiles - 1), 0)

    # Explicit VMEM budget: 2 inputs x 2 pipeline buffers x tile bytes + slack,
    # capped well under v7x's 64 MiB per-TC VMEM.
    block_bytes = tile_b * c * (out_itemsize + lab_itemsize)
    vmem_limit = int(min(max(2.5 * block_bytes + (2 << 20), 16 << 20), 48 << 20))

    # TODO(synk): for vocab-scale C, restructure to a 2-D (batch, C) grid with
    # an online logsumexp so the batch tile is not limited by C.
    partials = pl.pallas_call(
        kernel,
        out_shape=jax.ShapeDtypeStruct((num_splits, 8, 128), jnp.float32),
        grid_spec=pltpu.PrefetchScalarGridSpec(
            num_scalar_prefetch=0,
            grid=(num_splits, tiles_per_split),
            in_specs=[
                pl.BlockSpec((tile_b, c), in_map),
                pl.BlockSpec((tile_b, c), in_map),
            ],
            out_specs=pl.BlockSpec((1, 8, 128), lambda s, i: (s, 0, 0)),
            scratch_shapes=[pltpu.VMEM((1, c), jnp.float32)],
        ),
        compiler_params=pltpu.CompilerParams(
            dimension_semantics=("parallel", "arbitrary"),
            vmem_limit_bytes=vmem_limit,
        ),
    )(outputs, labels)

    return jnp.sum(partials[:, 0, 0]) / jnp.float32(n)


def _reference(outputs, labels):
    logsm = jax.nn.log_softmax(outputs.astype(jnp.float32), axis=1)
    return -(logsm * labels.astype(jnp.float32)).sum(axis=1).mean()


if __name__ == "__main__":
    key = jax.random.PRNGKey(0)
    k1, k2, k3, k4 = jax.random.split(key, 4)

    # --- Test 1: small batch, single tile / single split (auto config) ---
    N, C = 16, 32
    outputs = jax.random.normal(k1, (N, C), dtype=jnp.float32)
    raw = jax.random.uniform(k2, (N, C), dtype=jnp.float32)
    labels = (raw > 0.7).astype(jnp.float32)
    labels = labels / jnp.maximum(labels.sum(axis=1, keepdims=True), 1.0)

    loss = jax.block_until_ready(partial_loss(outputs, labels))
    ref = _reference(outputs, labels)
    assert jnp.allclose(loss, ref, atol=1e-5, rtol=1e-5), (loss, ref)

    # --- Test 2: non-divisible batch, multi-tile, dual-split reduction path ---
    N2, C2 = 50, 32
    outputs2 = jax.random.normal(k3, (N2, C2), dtype=jnp.float32)
    raw2 = jax.random.uniform(k4, (N2, C2), dtype=jnp.float32)
    labels2 = (raw2 > 0.6).astype(jnp.float32)
    labels2 = labels2 / jnp.maximum(labels2.sum(axis=1, keepdims=True), 1.0)

    loss2 = jax.block_until_ready(
        partial_loss(outputs2, labels2, tile_b=8, num_splits=2))
    ref2 = _reference(outputs2, labels2)
    assert jnp.allclose(loss2, ref2, atol=1e-5, rtol=1e-5), (loss2, ref2)

    print("KERNEL_OK")
</pallas_src>

<mosaic_0001>
module attributes {stable_mosaic.version = 11 : i64} {
  func.func @_partial_loss_kernel(%arg0: i32, %arg1: i32, %arg2: memref<16x32xf32, #tpu.memory_space<vmem>>, %arg3: memref<16x32xf32, #tpu.memory_space<vmem>>, %arg4: memref<1x8x128xf32, #tpu.memory_space<vmem>>, %arg5: memref<1x32xf32, #tpu.memory_space<vmem>>) attributes {dimension_semantics = [#tpu.dimension_semantics<parallel>, #tpu.dimension_semantics<arbitrary>], iteration_bounds = array<i64: 1, 1>, scalar_prefetch = 0 : i64, scratch_operands = 1 : i64, tpu.core_type = #tpu.core_type<tc>, window_params = [{transform_indices = @transform_0, window_bounds = array<i64: 16, 32>}, {transform_indices = @transform_1, window_bounds = array<i64: 16, 32>}, {transform_indices = @transform_2, window_bounds = array<i64: 1, 8, 128>}]} {
    %c0_i32 = arith.constant 0 : i32
    %0 = arith.cmpi eq, %arg1, %c0_i32 : i32
    %1 = arith.extui %0 : i1 to i32
    %c0_i32_0 = arith.constant 0 : i32
    %2 = arith.cmpi ne, %1, %c0_i32_0 : i32
    scf.if %2 {
      %cst_15 = arith.constant 0.000000e+00 : f32
      %40 = vector.broadcast %cst_15 : f32 to vector<1x32xf32>
      %c0_16 = arith.constant 0 : index
      %c0_17 = arith.constant 0 : index
      %41 = vector.load %arg5[%c0_16, %c0_17] : memref<1x32xf32, #tpu.memory_space<vmem>>, vector<1x32xf32>
      tpu.vector_store %arg5[%c0_16, %c0_17], %40 {strides = array<i32>} : memref<1x32xf32, #tpu.memory_space<vmem>>, vector<1x32xf32>,
    } else {
    }
    %c0 = arith.constant 0 : index
    %c0_1 = arith.constant 0 : index
    %3 = vector.load %arg2[%c0, %c0_1] : memref<16x32xf32, #tpu.memory_space<vmem>>, vector<16x32xf32>
    %c0_2 = arith.constant 0 : index
    %c0_3 = arith.constant 0 : index
    %4 = vector.load %arg3[%c0_2, %c0_3] : memref<16x32xf32, #tpu.memory_space<vmem>>, vector<16x32xf32>
    %c1_i32 = arith.constant 1 : i32
    %5 = arith.muli %arg0, %c1_i32 : i32
    %6 = arith.addi %5, %arg1 : i32
    %c16_i32 = arith.constant 16 : i32
    %7 = arith.muli %6, %c16_i32 : i32
    %8 = tpu.iota {dimensions = array<i32: 0>} : vector<16x1xi32>
    %9 = vector.broadcast %7 : i32 to vector<16x1xi32>
    %10 = arith.addi %9, %8 : vector<16x1xi32>
    %c16_i32_4 = arith.constant 16 : i32
    %11 = vector.broadcast %c16_i32_4 : i32 to vector<16x1xi32>
    %12 = arith.cmpi slt, %10, %11 : vector<16x1xi32>
    %cst = arith.constant 0.000000e+00 : f32
    %13 = vector.shape_cast %12 : vector<16x1xi1> to vector<16x1xi1>
    %14 = vector.broadcast %13 : vector<16x1xi1> to vector<16x32xi1>
    %15 = vector.broadcast %cst : f32 to vector<16x32xf32>
    %16 = arith.select %14, %3, %15 : vector<16x32xi1>, vector<16x32xf32>
    %cst_5 = arith.constant 0.000000e+00 : f32
    %17 = vector.shape_cast %12 : vector<16x1xi1> to vector<16x1xi1>
    %18 = vector.broadcast %17 : vector<16x1xi1> to vector<16x32xi1>
    %19 = vector.broadcast %cst_5 : f32 to vector<16x32xf32>
    %20 = arith.select %18, %4, %19 : vector<16x32xi1>, vector<16x32xf32>
    %cst_6 = arith.constant dense<0xFF800000> : vector<16xf32>
    %21 = vector.multi_reduction <maximumf>, %16, %cst_6 [1] : vector<16x32xf32> to vector<16xf32>
    %22 = vector.shape_cast %21 : vector<16xf32> to vector<16x1xf32>
    %23 = vector.broadcast %22 : vector<16x1xf32> to vector<16x32xf32>
    %24 = arith.subf %16, %23 : vector<16x32xf32>
    %25 = math.exp %24 : vector<16x32xf32>
    %cst_7 = arith.constant dense<0.000000e+00> : vector<16xf32>
    %26 = vector.multi_reduction <add>, %25, %cst_7 [1] : vector<16x32xf32> to vector<16xf32>
    %27 = vector.shape_cast %26 : vector<16xf32> to vector<16x1xf32>
    %28 = math.log %27 : vector<16x1xf32>
    %c0_8 = arith.constant 0 : index
    %c0_9 = arith.constant 0 : index
    %29 = vector.load %arg5[%c0_8, %c0_9] : memref<1x32xf32, #tpu.memory_space<vmem>>, vector<1x32xf32>
    %30 = vector.broadcast %28 : vector<16x1xf32> to vector<16x32xf32>
    %31 = arith.subf %30, %24 : vector<16x32xf32>
    %32 = arith.mulf %31, %20 : vector<16x32xf32>
    %cst_10 = arith.constant dense<0.000000e+00> : vector<32xf32>
    %33 = vector.multi_reduction <add>, %32, %cst_10 [0] : vector<16x32xf32> to vector<32xf32>
    %34 = vector.shape_cast %33 : vector<32xf32> to vector<1x32xf32>
    %35 = arith.addf %29, %34 : vector<1x32xf32>
    %c0_11 = arith.constant 0 : index
    %c0_12 = arith.constant 0 : index
    %36 = vector.load %arg5[%c0_11, %c0_12] : memref<1x32xf32, #tpu.memory_space<vmem>>, vector<1x32xf32>
    tpu.vector_store %arg5[%c0_11, %c0_12], %35 {strides = array<i32>} : memref<1x32xf32, #tpu.memory_space<vmem>>, vector<1x32xf32>,
    %c0_i32_13 = arith.constant 0 : i32
    %37 = arith.cmpi eq, %arg1, %c0_i32_13 : i32
    %38 = arith.extui %37 : i1 to i32
    %c0_i32_14 = arith.constant 0 : i32
    %39 = arith.cmpi ne, %38, %c0_i32_14 : i32
    scf.if %39 {
      %c0_15 = arith.constant 0 : index
      %c0_16 = arith.constant 0 : index
      %40 = vector.load %arg5[%c0_15, %c0_16] : memref<1x32xf32, #tpu.memory_space<vmem>>, vector<1x32xf32>
      %41 = vector.shape_cast %40 : vector<1x32xf32> to vector<1x1x32xf32>
      %cst_17 = arith.constant dense<0.000000e+00> : vector<1xf32>
      %42 = vector.multi_reduction <add>, %41, %cst_17 [1, 2] : vector<1x1x32xf32> to vector<1xf32>
      %43 = vector.shape_cast %42 : vector<1xf32> to vector<1x1x1xf32>
      %44 = vector.extract %43[0, 0, 0] : f32 from vector<1x1x1xf32>
      %cst_18 = arith.constant 0.000000e+00 : f32
      %45 = vector.broadcast %cst_18 : f32 to vector<1x8x128xf32>
      %46 = vector.broadcast %44 : f32 to vector<1x8x128xf32>
      %47 = arith.addf %45, %46 : vector<1x8x128xf32>
      %c0_19 = arith.constant 0 : index
      %c0_20 = arith.constant 0 : index
      %c0_21 = arith.constant 0 : index
      %48 = vector.load %arg4[%c0_19, %c0_20, %c0_21] : memref<1x8x128xf32, #tpu.memory_space<vmem>>, vector<1x8x128xf32>
      tpu.vector_store %arg4[%c0_19, %c0_20, %c0_21], %47 {strides = array<i32>} : memref<1x8x128xf32, #tpu.memory_space<vmem>>, vector<1x8x128xf32>,
    } else {
    }
    return
  }
  func.func @transform_0(%arg0: i32, %arg1: i32) -> (i32, i32) {
    %c1_i32 = arith.constant 1 : i32
    %0 = arith.muli %arg0, %c1_i32 : i32
    %1 = arith.addi %0, %arg1 : i32
    %c0_i32 = arith.constant 0 : i32
    %2 = arith.minsi %1, %c0_i32 : i32
    %c0_i32_0 = arith.constant 0 : i32
    %c0_i32_1 = arith.constant 0 : i32
    return %2, %c0_i32_0 : i32, i32
  }
  func.func @transform_1(%arg0: i32, %arg1: i32) -> (i32, i32) {
    %c1_i32 = arith.constant 1 : i32
    %0 = arith.muli %arg0, %c1_i32 : i32
    %1 = arith.addi %0, %arg1 : i32
    %c0_i32 = arith.constant 0 : i32
    %2 = arith.minsi %1, %c0_i32 : i32
    %c0_i32_0 = arith.constant 0 : i32
    %c0_i32_1 = arith.constant 0 : i32
    return %2, %c0_i32_0 : i32, i32
  }
  func.func @transform_2(%arg0: i32, %arg1: i32) -> (i32, i32, i32) {
    %c0_i32 = arith.constant 0 : i32
    %c0_i32_0 = arith.constant 0 : i32
    %c0_i32_1 = arith.constant 0 : i32
    return %arg0, %c0_i32, %c0_i32_0 : i32, i32, i32
  }
}

</mosaic_0001>

<bundles_post_ra>
// kernel: tpu_custom_call.1
= control target key start
LH: loop header
LB: loop body
LE: loop exit
PB: predicated region body
PF: predicated region fallthrough
CT: control target
= control target key end

     0   :  { %7 = vsyncpa [#allocation4], 0  ;;  %s304_s0 = inlined_call_operand.hbm [shape: f32[16,32], index: 0, kind: input, shape index: {}]   ;;  %s305_s1 = inlined_call_operand.hbm [shape: f32[16,32], index: 1, kind: input, shape index: {}]   ;;  %s306_s2 = inlined_call_operand.hbm [shape: f32[1,8,128], index: 2, kind: output, shape index: {}]  }
   0x1   :  { %8 = vsyncpa [#allocation7], 0 }
   0x2   :  { %9 = vsyncpa [#allocation5], 0  ;;  %s20_s11 = sshll.u32 %s304_s0, 4  ;;  %s265_s12 = smov [#allocation3]   ;;  %s21_s11 = int_to_ptr.hbm [resolvable:$true] %s20_s11 }
   0x3   :  { %s22_s13 = sshll.u32 %s265_s12, 4  ;;  %s39_s16 = sshll.u32 %s305_s1, 4  ;;  %s23_s13 = int_to_ptr.vmem [resolvable:$true] %s22_s13  ;;  %s40_s16 = int_to_ptr.hbm [resolvable:$true] %s39_s16 }
   0x4   :  { %s266_s17 = smov 128   ;;  %s267_s18 = smov 8  }
   0x5   :  { %28 = dma.hbm_to_vmem [thread:$0]  %s21_s11, 256, %s23_s13, [#allocation4], %s266_s17, %s266_s17, %s267_s18  }
   0x6   :  { %s268_s19 = smov [#allocation6]  }
   0x7   :  { %s41_s20 = sshll.u32 %s268_s19, 4  ;;  %s42_s20 = int_to_ptr.vmem [resolvable:$true] %s41_s20 }
   0x8   :  { %47 = dma.hbm_to_vmem [thread:$0]  %s40_s16, 256, %s42_s20, [#allocation7], %s266_s17, %s266_s17, %s267_s18  }
   0x9   :  { %259 = dma.done.wait [#allocation4], 256  }
   0xa   :  { %260 = vsyncadd [#allocation4], 4294967040 }
   0xb   :  { %261 = dma.done.wait [#allocation7], 256  }
   0xc   :  { %262 = vsyncadd [#allocation7], 4294967040  ;;  %vm92_vm0 = vcmask 261120   ;;  %v70_v0 = vld [vmem:[#allocation3] sm:$0xff]  ;;  %v71_v2 = vld [vmem:[#allocation3 + $0x8] sm:$0xff]  ;;  %vm68_vm1 = vcmask 253952  }
   0xd   :  { %v93_v1 = vsel %vm92_vm0, %v70_v0, -inf  ;;  %v96_v3 = vsel %vm92_vm0, %v71_v2, -inf  ;;  %v269_v14 = vmov 0.0   ;;  %v72_v21 = vld [vmem:[#allocation6] sm:$0xff]  ;;  %v73_v23 = vld [vmem:[#allocation6 + $0x8] sm:$0xff]  ;;  %s270_s0 = smov [#allocation8]  }
   0xe   :  { %94 = vmax.xlane.f32.xlu0 %v93_v1  ;;  %69 = vst.msk [vmem:[#allocation2] sm:$0x1] %vm68_vm1, %v269_v14  ;;  %s154_s1 = sshll.u32 %s270_s0, 4  ;;  %s156_s23 = sshll.u32 %s306_s2, 4  ;;  %s155_s1 = int_to_ptr.vmem [resolvable:$true] %s154_s1  ;;  %s157_s23 = int_to_ptr.hbm [resolvable:$true] %s156_s23 }
  0x15   :  { %v115_v35 = vld [vmem:[#allocation2] sm:$0x1] }
  0x16   :  { %97 = vmax.xlane.f32.xlu0 %v96_v3 }
  0x81   :  { %v95_v4 = vpop.xlane.xlu0 %94 }
  0x82   :  { %v99_v5 = vsub.f32 %v70_v0, %v95_v4 }
  0x84   :  { %v101_v6 = vmul.f32 1.442695, %v99_v5 }
  0x86   :  { %179 = vpow2.f32 %v101_v6 }
  0x89   :  { %v98_v7 = vpop.xlane.xlu0 %97 }
  0x8a   :  { %v100_v8 = vsub.f32 %v71_v2, %v98_v7 }
  0x8c   :  { %v180_v9 = vpop.eup %179  ;;  %v103_v10 = vmul.f32 1.442695, %v100_v8 }
  0x8d   :  { %v105_v11 = vsel %vm92_vm0, %v180_v9, 0.0 }
  0x8e   :  { %181 = vpow2.f32 %v103_v10  ;;  %106 = vadd.xlane.f32.xlu1 %v105_v11 }
  0x94   :  { %v182_v12 = vpop.eup %181 }
  0x95   :  { %v108_v13 = vsel %vm92_vm0, %v182_v12, 0.0 }
  0x96   :  { %109 = vadd.xlane.f32.xlu1 %v108_v13 }
 0x101   :  { %v107_v15 = vpop.xlane.xlu1 %106 }
 0x102   :  { %183 = vlog2.f32 %v107_v15 }
 0x108   :  { %v184_v16 = vpop.eup %183 }
 0x109   :  { %v110_v17 = vpop.xlane.xlu1 %109  ;;  %v112_v18 = vmul.f32 0.6931472, %v184_v16 }
 0x10a   :  { %185 = vlog2.f32 %v110_v17 }
 0x10b   :  { %v116_v19 = vsub.f32 %v112_v18, %v99_v5 }
 0x10d   :  { %v118_v24 = vmul.f32 %v116_v19, %v72_v21 }
 0x10f   :  { %v120_v27 = vsel %vm92_vm0, %v118_v24, 0.0 }
 0x110   :  { %v186_v20 = vpop.eup %185 }
 0x111   :  { %v114_v22 = vmul.f32 0.6931472, %v186_v20 }
 0x113   :  { %v117_v25 = vsub.f32 %v114_v22, %v100_v8 }
 0x115   :  { %v119_v26 = vmul.f32 %v117_v25, %v73_v23 }
 0x117   :  { %v121_v28 = vsel %vm92_vm0, %v119_v26, 0.0 }
 0x118   :  { %v122_v29 = vadd.f32 %v121_v28, %v120_v27 }
 0x11a   :  { %v123_v30 = vrot.slane %v122_v29, 4 }
 0x11c   :  { %v124_v31 = vadd.f32 %v123_v30, %v122_v29 }
 0x11e   :  { %v125_v32 = vrot.slane %v124_v31, 2 }
 0x120   :  { %v126_v33 = vadd.f32 %v125_v32, %v124_v31 }
 0x122   :  { %v127_v34 = vrot.slane %v126_v33, 1 }
 0x124   :  { %v128_v36 = vadd.f32 %v127_v34, %v126_v33 }
 0x126   :  { %v129_v37 = vadd.f32 %v128_v36, %v115_v35 }
 0x128   :  { %131 = vst.msk [vmem:[#allocation2] sm:$0x1] %vm68_vm1, %v129_v37 }
 0x12f   :  { %v135_v38 = vld [vmem:[#allocation2] sm:$0x1] }
 0x130   :  { %v136_v39 = vsel %vm68_vm1, %v135_v38, 0.0 }
 0x131   :  { %137 = vadd.xlane.f32.xlu2 %v136_v39 }
 0x1a4   :  { %v138_v40 = vpop.xlane.xlu2 %137 }
 0x1a5   :  { %v139_v41 = vrot.slane %v138_v40, 4 }
 0x1a7   :  { %v140_v42 = vadd.f32 %v139_v41, %v138_v40 }
 0x1a9   :  { %v141_v43 = vrot.slane %v140_v42, 2 }
 0x1ab   :  { %v142_v44 = vadd.f32 %v141_v43, %v140_v42 }
 0x1ad   :  { %v143_v45 = vrot.slane %v142_v44, 1 }
 0x1af   :  { %v144_v46 = vadd.f32 %v143_v45, %v142_v44 }
 0x1b1   :  { %171 = vpush %v144_v46 }
 0x1e2   :  { %s172_s24 = spop %171 }
 0x1e3   :  { %v146_v47 = vstv %s172_s24 }
 0x1e4   :  { %148 = vst [vmem:[#allocation8] sm:$0xff] %v146_v47 }
 0x1e5   :  { %159 = dma.vmem_to_hbm [thread:$0]  %s155_s1, 128, %s157_s23, [#allocation5]  }
 0x1e6   :  { %263 = dma.done.wait [#allocation5], 128  }
 0x1e7   :  { %264 = vsyncadd [#allocation5], 4294967168 }
 0x1e8   :  { %164 = vsyncpa [#allocation4], 1 }
 0x1e9   :  { %165 = vsyncpa [#allocation7], 1 }
 0x1ea   :  { %166 = vsyncpa [#allocation5], 1 }

</bundles_post_ra>
